<compile_context>
chip_gen: v5e
topology: v5e:2x2
jax: 0.10.0
libtpu: 0.0.40
codegen_flags: <defaults>
</compile_context>

<pallas_src>
import jax
import jax.numpy as jnp
from jax import lax
from jax.experimental import pallas as pl
from jax.experimental.pallas import tpu as pltpu


def _round_up(n, m):
    return ((n + m - 1) // m) * m


def _projection_kernel(x_ref, w1_ref, b1_ref, w2_ref, b2_ref, o_ref):
    # Linear1 with folded BatchNorm (eval) -> ReLU.
    # bf16 MXU operands, f32 accumulation; elementwise stays f32.
    x = x_ref[...].astype(jnp.bfloat16)
    h = jnp.dot(x, w1_ref[...], preferred_element_type=jnp.float32)
    h = jnp.maximum(h + b1_ref[...], 0.0)

    # Dropout(p=0.5) is identity in eval mode.

    # Linear2.
    y = jnp.dot(h.astype(jnp.bfloat16), w2_ref[...],
                preferred_element_type=jnp.float32)
    y = y + b2_ref[...]

    # F.normalize (dim=1, eps=1e-12): clamp the squared norm at eps^2 and use
    # rsqrt (EUP) instead of sqrt + divide.  Padded output columns are exactly
    # zero, so they do not perturb the norm.
    sumsq = jnp.sum(y * y, axis=-1, keepdims=True)
    inv = lax.rsqrt(jnp.maximum(sumsq, 1e-24))
    o_ref[...] = (y * inv).astype(o_ref.dtype)


def projection_forward(x, params, *, block_b=256):
    """x: (B, input_dim) float32.  params: dict from init_params."""
    B, in_dim = x.shape
    w1, b1, w2, b2 = params["w1"], params["b1"], params["w2"], params["b2"]
    in_p, hid_p = w1.shape
    out_p = w2.shape[1]
    out_dim = params["out_dim"]

    # Batch tile: multiple of 8 sublanes, capped at block_b rows.
    TB = min(block_b, _round_up(B, 8))
    Bp = _round_up(B, TB)

    # Zero-pad batch rows and input-feature lanes (lane-dense, grid-even).
    x_p = jnp.zeros((Bp, in_p), jnp.float32).at[:B, :in_dim].set(x)

    grid = (Bp // TB,)
    out = pl.pallas_call(
        _projection_kernel,
        out_shape=jax.ShapeDtypeStruct((Bp, out_p), jnp.float32),
        grid=grid,
        in_specs=[
            pl.BlockSpec((TB, in_p), lambda i: (i, 0)),      # x: pipelined tile
            pl.BlockSpec((in_p, hid_p), lambda i: (0, 0)),   # w1 (BN folded): resident
            pl.BlockSpec((1, hid_p), lambda i: (0, 0)),      # b1 (BN folded): resident
            pl.BlockSpec((hid_p, out_p), lambda i: (0, 0)),  # w2: resident
            pl.BlockSpec((1, out_p), lambda i: (0, 0)),      # b2: resident
        ],
        out_specs=pl.BlockSpec((TB, out_p), lambda i: (i, 0)),
        compiler_params=pltpu.CompilerParams(
            dimension_semantics=("parallel",),
            vmem_limit_bytes=48 * 1024 * 1024,
        ),
    )(x_p, w1, b1, w2, b2)

    return out[:B, :out_dim]


def init_params(key, input_dim, hidden_dim, output_dim):
    k1, k2, k3, k4 = jax.random.split(key, 4)

    # Linear 1 (stored transposed: (in, hid)), PyTorch-style uniform init.
    lim1 = 1.0 / jnp.sqrt(input_dim)
    w1 = jax.random.uniform(k1, (input_dim, hidden_dim), jnp.float32, -lim1, lim1)
    b1 = jax.random.uniform(k2, (1, hidden_dim), jnp.float32, -lim1, lim1)

    # BatchNorm1d (eval) running stats + affine, folded:
    #   y = (h - mean)/sqrt(var+eps)*gamma + beta = h*scale + shift
    gamma = jnp.ones((1, hidden_dim), jnp.float32)
    beta = jnp.zeros((1, hidden_dim), jnp.float32)
    running_mean = jnp.zeros((1, hidden_dim), jnp.float32)
    running_var = jnp.ones((1, hidden_dim), jnp.float32)
    eps = 1e-5
    inv_std = gamma / jnp.sqrt(running_var + eps)
    bn_scale = inv_std
    bn_shift = beta - running_mean * inv_std

    # Fold BN into Linear1 (numerically identical in eval mode).
    w1_f = w1 * bn_scale            # (in, hid) * (1, hid)
    b1_f = b1 * bn_scale + bn_shift

    # Linear 2 (stored transposed: (hid, out)).
    lim2 = 1.0 / jnp.sqrt(hidden_dim)
    w2 = jax.random.uniform(k3, (hidden_dim, output_dim), jnp.float32, -lim2, lim2)
    b2 = jax.random.uniform(k4, (1, output_dim), jnp.float32, -lim2, lim2)

    # Lane-dense padding (multiples of 128) for every feature axis; zero pad so
    # padded hidden units stay 0 after ReLU and padded outputs stay 0.
    in_p = _round_up(input_dim, 128)
    hid_p = _round_up(hidden_dim, 128)
    out_p = _round_up(output_dim, 128)

    w1_p = jnp.zeros((in_p, hid_p), jnp.float32).at[:input_dim, :hidden_dim].set(w1_f)
    b1_p = jnp.zeros((1, hid_p), jnp.float32).at[:, :hidden_dim].set(b1_f)
    w2_p = jnp.zeros((hid_p, out_p), jnp.float32).at[:hidden_dim, :output_dim].set(w2)
    b2_p = jnp.zeros((1, out_p), jnp.float32).at[:, :output_dim].set(b2)

    return {
        # Kernel params: weights in bf16 (halves resident VMEM + MXU bytes),
        # biases in f32 (elementwise path stays f32).
        "w1": w1_p.astype(jnp.bfloat16),
        "b1": b1_p,
        "w2": w2_p.astype(jnp.bfloat16),
        "b2": b2_p,
        "out_dim": output_dim,
        # Full-precision, unpadded copies for the pure-JAX reference.
        "ref": {"w1": w1, "b1": b1, "bn_scale": bn_scale, "bn_shift": bn_shift,
                "w2": w2, "b2": b2},
    }


def reference_forward(x, params):
    p = params["ref"]
    h = x @ p["w1"] + p["b1"]
    h = h * p["bn_scale"] + p["bn_shift"]
    h = jnp.maximum(h, 0.0)
    y = h @ p["w2"] + p["b2"]
    n = jnp.maximum(jnp.sqrt(jnp.sum(y * y, axis=-1, keepdims=True)), 1e-12)
    return y / n


if __name__ == "__main__":
    key = jax.random.PRNGKey(0)
    kx, kp = jax.random.split(key)

    batch, input_dim, hidden_dim, output_dim = 8, 32, 64, 16
    x = jax.random.normal(kx, (batch, input_dim), jnp.float32)
    params = init_params(kp, input_dim, hidden_dim, output_dim)

    out = projection_forward(x, params)
    out = jax.block_until_ready(out)

    ref = reference_forward(x, params)
    assert out.shape == (batch, output_dim)
    # bf16 MXU operands (f32 accumulate) vs f32 reference -> loosened tolerance.
    assert jnp.allclose(out, ref, atol=2e-2, rtol=2e-2), "mismatch vs reference"

    print("KERNEL_OK")
</pallas_src>

<mosaic_0001>
module attributes {stable_mosaic.version = 11 : i64} {
  func.func @_projection_kernel(%arg0: i32, %arg1: memref<8x128xf32, #tpu.memory_space<vmem>>, %arg2: memref<128x128xbf16, #tpu.memory_space<vmem>>, %arg3: memref<1x128xf32, #tpu.memory_space<vmem>>, %arg4: memref<128x128xbf16, #tpu.memory_space<vmem>>, %arg5: memref<1x128xf32, #tpu.memory_space<vmem>>, %arg6: memref<8x128xf32, #tpu.memory_space<vmem>>) attributes {dimension_semantics = [#tpu.dimension_semantics<parallel>], iteration_bounds = array<i64: 1>, scalar_prefetch = 0 : i64, scratch_operands = 0 : i64, tpu.core_type = #tpu.core_type<tc>, window_params = [{transform_indices = @transform_0, window_bounds = array<i64: 8, 128>}, {pipeline_mode = #tpu.pipeline_mode<synchronous>, transform_indices = @transform_1, window_bounds = array<i64: 128, 128>}, {pipeline_mode = #tpu.pipeline_mode<synchronous>, transform_indices = @transform_2, window_bounds = array<i64: 1, 128>}, {pipeline_mode = #tpu.pipeline_mode<synchronous>, transform_indices = @transform_3, window_bounds = array<i64: 128, 128>}, {pipeline_mode = #tpu.pipeline_mode<synchronous>, transform_indices = @transform_4, window_bounds = array<i64: 1, 128>}, {transform_indices = @transform_5, window_bounds = array<i64: 8, 128>}]} {
    %c0 = arith.constant 0 : index
    %c0_0 = arith.constant 0 : index
    %0 = vector.load %arg1[%c0, %c0_0] : memref<8x128xf32, #tpu.memory_space<vmem>>, vector<8x128xf32>
    %1 = arith.truncf %0 : vector<8x128xf32> to vector<8x128xbf16>
    %c0_1 = arith.constant 0 : index
    %c0_2 = arith.constant 0 : index
    %2 = vector.load %arg2[%c0_1, %c0_2] : memref<128x128xbf16, #tpu.memory_space<vmem>>, vector<128x128xbf16>
    %cst = arith.constant dense<0.000000e+00> : vector<8x128xf32>
    %3 = tpu.matmul %1, %2, %cst {dimension_numbers = #tpu.dot_dimension_numbers<[1], [0], [0], [1], [0, 0, 1, 1], [], []>} : vector<8x128xbf16>, vector<128x128xbf16>, vector<8x128xf32> -> vector<8x128xf32>
    %c0_3 = arith.constant 0 : index
    %c0_4 = arith.constant 0 : index
    %4 = vector.load %arg3[%c0_3, %c0_4] : memref<1x128xf32, #tpu.memory_space<vmem>>, vector<1x128xf32>
    %5 = vector.broadcast %4 : vector<1x128xf32> to vector<8x128xf32>
    %6 = arith.addf %3, %5 : vector<8x128xf32>
    %cst_5 = arith.constant 0.000000e+00 : f32
    %7 = vector.broadcast %cst_5 : f32 to vector<8x128xf32>
    %8 = arith.maximumf %6, %7 : vector<8x128xf32>
    %9 = arith.truncf %8 : vector<8x128xf32> to vector<8x128xbf16>
    %c0_6 = arith.constant 0 : index
    %c0_7 = arith.constant 0 : index
    %10 = vector.load %arg4[%c0_6, %c0_7] : memref<128x128xbf16, #tpu.memory_space<vmem>>, vector<128x128xbf16>
    %cst_8 = arith.constant dense<0.000000e+00> : vector<8x128xf32>
    %11 = tpu.matmul %9, %10, %cst_8 {dimension_numbers = #tpu.dot_dimension_numbers<[1], [0], [0], [1], [0, 0, 1, 1], [], []>} : vector<8x128xbf16>, vector<128x128xbf16>, vector<8x128xf32> -> vector<8x128xf32>
    %c0_9 = arith.constant 0 : index
    %c0_10 = arith.constant 0 : index
    %12 = vector.load %arg5[%c0_9, %c0_10] : memref<1x128xf32, #tpu.memory_space<vmem>>, vector<1x128xf32>
    %13 = vector.broadcast %12 : vector<1x128xf32> to vector<8x128xf32>
    %14 = arith.addf %11, %13 : vector<8x128xf32>
    %15 = arith.mulf %14, %14 : vector<8x128xf32>
    %cst_11 = arith.constant dense<0.000000e+00> : vector<8xf32>
    %16 = vector.multi_reduction <add>, %15, %cst_11 [1] : vector<8x128xf32> to vector<8xf32>
    %17 = vector.shape_cast %16 : vector<8xf32> to vector<8x1xf32>
    %cst_12 = arith.constant 1.000000e-24 : f32
    %18 = vector.broadcast %cst_12 : f32 to vector<8x1xf32>
    %19 = arith.maximumf %17, %18 : vector<8x1xf32>
    %20 = math.rsqrt %19 : vector<8x1xf32>
    %21 = vector.broadcast %20 : vector<8x1xf32> to vector<8x128xf32>
    %22 = arith.mulf %14, %21 : vector<8x128xf32>
    %c0_13 = arith.constant 0 : index
    %c0_14 = arith.constant 0 : index
    %23 = vector.load %arg6[%c0_13, %c0_14] : memref<8x128xf32, #tpu.memory_space<vmem>>, vector<8x128xf32>
    tpu.vector_store %arg6[%c0_13, %c0_14], %22 {strides = array<i32>} : memref<8x128xf32, #tpu.memory_space<vmem>>, vector<8x128xf32>,
    return
  }
  func.func @transform_0(%arg0: i32) -> (i32, i32) {
    %c0_i32 = arith.constant 0 : i32
    %c0_i32_0 = arith.constant 0 : i32
    return %arg0, %c0_i32 : i32, i32
  }
  func.func @transform_1(%arg0: i32) -> (i32, i32) {
    %c0_i32 = arith.constant 0 : i32
    %c0_i32_0 = arith.constant 0 : i32
    %c0_i32_1 = arith.constant 0 : i32
    return %c0_i32, %c0_i32_0 : i32, i32
  }
  func.func @transform_2(%arg0: i32) -> (i32, i32) {
    %c0_i32 = arith.constant 0 : i32
    %c0_i32_0 = arith.constant 0 : i32
    %c0_i32_1 = arith.constant 0 : i32
    return %c0_i32, %c0_i32_0 : i32, i32
  }
  func.func @transform_3(%arg0: i32) -> (i32, i32) {
    %c0_i32 = arith.constant 0 : i32
    %c0_i32_0 = arith.constant 0 : i32
    %c0_i32_1 = arith.constant 0 : i32
    return %c0_i32, %c0_i32_0 : i32, i32
  }
  func.func @transform_4(%arg0: i32) -> (i32, i32) {
    %c0_i32 = arith.constant 0 : i32
    %c0_i32_0 = arith.constant 0 : i32
    %c0_i32_1 = arith.constant 0 : i32
    return %c0_i32, %c0_i32_0 : i32, i32
  }
  func.func @transform_5(%arg0: i32) -> (i32, i32) {
    %c0_i32 = arith.constant 0 : i32
    %c0_i32_0 = arith.constant 0 : i32
    return %arg0, %c0_i32 : i32, i32
  }
}

</mosaic_0001>

<bundles_post_ra>
// kernel: tpu_custom_call.1
= control target key start
LH: loop header
LB: loop body
LE: loop exit
PB: predicated region body
PF: predicated region fallthrough
CT: control target
= control target key end

     0   :  { %10 = vsyncpa [#allocation3], 0  ;;  %s512_s0 = inlined_call_operand.hbm [shape: f32[8,128], index: 0, kind: input, shape index: {}]   ;;  %s513_s1 = inlined_call_operand.hbm [shape: bf16[128,128], index: 1, kind: input, shape index: {}]   ;;  %s514_s2 = inlined_call_operand.vmem [shape: f32[1,128], index: 2, kind: input, shape index: {}]   ;;  %s515_s3 = inlined_call_operand.hbm [shape: bf16[128,128], index: 3, kind: input, shape index: {}]   ;;  %s516_s4 = inlined_call_operand.vmem [shape: f32[1,128], index: 4, kind: input, shape index: {}]   ;;  %s517_s5 = inlined_call_operand.hbm [shape: f32[8,128], index: 5, kind: output, shape index: {}]  }
   0x1   :  { %11 = vsyncpa [#allocation6], 0  ;;  %s28_s20 = sshll.u32 %s513_s1, 4  ;;  %s29_s20 = int_to_ptr.hbm [resolvable:$true] %s28_s20 }
   0x2   :  { %12 = vsyncpa [#allocation4], 0  ;;  %s458_s21 = smov [#allocation5]   ;;  %s18_s25 = sshll.u32 %s512_s0, 4  ;;  %s19_s25 = int_to_ptr.hbm [resolvable:$true] %s18_s25 }
   0x3   :  { %s30_s22 = sshll.u32 %s458_s21, 4  ;;  %s459_s26 = smov 64   ;;  %s31_s22 = int_to_ptr.vmem [resolvable:$true] %s30_s22 }
   0x4   :  { %s460_s27 = smov 4   ;;  %s461_s28 = smov [#allocation2]  }
   0x5   :  { %36 = dma.hbm_to_vmem [thread:$0]  %s29_s20, 1024, %s31_s22, [#allocation6], %s459_s26, %s459_s26, %s460_s27  }
   0x6   :  { %s20_s29 = sshll.u32 %s461_s28, 4  ;;  %s43_s7 = sshll.u32 %s515_s3, 4  ;;  %s21_s29 = int_to_ptr.vmem [resolvable:$true] %s20_s29  ;;  %s44_s7 = int_to_ptr.hbm [resolvable:$true] %s43_s7 }
   0x7   :  { %23 = dma.hbm_to_vmem [thread:$0]  %s19_s25, 128, %s21_s29, [#allocation3]  }
   0x8   :  { %s462_s1 = smov [#allocation7]  }
   0x9   :  { %s45_s8 = sshll.u32 %s462_s1, 4  ;;  %s46_s8 = int_to_ptr.vmem [resolvable:$true] %s45_s8 }
   0xa   :  { %51 = dma.hbm_to_vmem [thread:$0]  %s44_s7, 1024, %s46_s8, [#allocation6], %s459_s26, %s459_s26, %s460_s27  }
   0xb   :  { %452 = dma.done.wait [#allocation3], 128  }
   0xc   :  { %453 = vsyncadd [#allocation3], 4294967168 }
   0xd   :  { %454 = dma.done.wait [#allocation6], 2048  }
   0xe   :  { %455 = vsyncadd [#allocation6], 4294965248  ;;  %v337_v0 = vld [vmem:[#allocation5 + $0x38] sm:$0xff]  ;;  %v336_v1 = vld [vmem:[#allocation5 + $0x30] sm:$0xff]  ;;  %s255_s13 = sshll.u32 %s517_s5, 4  ;;  %s256_s13 = int_to_ptr.hbm [resolvable:$true] %s255_s13 }
   0xf   :  { %136 = vmatpush.bf16.msra.mxu0 %v337_v0  ;;  %v345_v2 = vld [vmem:[#allocation7 + $0x38] sm:$0xff]  ;;  %v344_v3 = vld [vmem:[#allocation7 + $0x30] sm:$0xff]  ;;  %v335_v4 = vld [vmem:[#allocation5 + $0x28] sm:$0xff] }
  0x10   :  { %219 = vmatpush.bf16.msra.mxu1 %v345_v2  ;;  %v343_v5 = vld [vmem:[#allocation7 + $0x28] sm:$0xff]  ;;  %v334_v6 = vld [vmem:[#allocation5 + $0x20] sm:$0xff]  ;;  %v333_v8 = vld [vmem:[#allocation5 + $0x18] sm:$0xff] }
  0x11   :  { %v342_v7 = vld [vmem:[#allocation7 + $0x20] sm:$0xff]  ;;  %v341_v9 = vld [vmem:[#allocation7 + $0x18] sm:$0xff]  ;;  %v332_v10 = vld [vmem:[#allocation5 + $0x10] sm:$0xff] }
  0x12   :  { %v340_v11 = vld [vmem:[#allocation7 + $0x10] sm:$0xff]  ;;  %v331_v12 = vld [vmem:[#allocation5 + $0x8] sm:$0xff]  ;;  %v330_v13 = vld [vmem:[#allocation5] sm:$0xff] }
  0x13   :  { %137 = vmatpush.bf16.msra.mxu0 %v336_v1  ;;  %v66_v14 = vld [vmem:[#allocation2] sm:$0xff]  ;;  %v339_v16 = vld [vmem:[#allocation7 + $0x8] sm:$0xff]  ;;  %v338_v17 = vld [vmem:[#allocation7] sm:$0xff] }
  0x14   :  { %220 = vmatpush.bf16.msra.mxu1 %v344_v3  ;;  %v67_v15 = vpack.c.bf16 %v66_v14, %v66_v14  ;;  %v352_v18 = vld [vmem:[%s514_s2] ss:$0 sm:$0xff]  ;;  %s463_s2 = smov [#allocation8]  }
  0x15   :  { %v353_v24 = vld [vmem:[%s516_s4] ss:$0 sm:$0xff]  ;;  %s253_s11 = sshll.u32 %s463_s2, 4  ;;  %s254_s11 = int_to_ptr.vmem [resolvable:$true] %s253_s11 }
  0x17   :  { %138 = vmatpush.bf16.msra.mxu0 %v335_v4 }
  0x18   :  { %221 = vmatpush.bf16.msra.mxu1 %v343_v5 }
  0x1b   :  { %139 = vmatpush.bf16.msra.mxu0 %v334_v6 }
  0x1c   :  { %222 = vmatpush.bf16.msra.mxu1 %v342_v7 }
  0x1f   :  { %140 = vmatpush.bf16.msra.mxu0 %v333_v8 }
  0x20   :  { %223 = vmatpush.bf16.msra.mxu1 %v341_v9 }
  0x23   :  { %141 = vmatpush.bf16.msra.mxu0 %v332_v10 }
  0x24   :  { %224 = vmatpush.bf16.msra.mxu1 %v340_v11 }
  0x27   :  { %142 = vmatpush.bf16.msra.mxu0 %v331_v12 }
  0x28   :  { %225 = vmatpush.bf16.msra.mxu1 %v339_v16 }
  0x2b   :  { %143 = vmatpush.bf16.msra.mxu0 %v330_v13 }
  0x2c   :  { %226 = vmatpush.bf16.msra.mxu1 %v338_v17 }
  0x2e   :  { %144 = vmatmul.bf16.vlgmr.msra.gmra.mxu0 %v67_v15 }
  0xab   :  { %v145_v19 = vpop.f32.mrf.mxu0 }
  0xac   :  { %v146_v20 = vadd.f32 %v352_v18, %v145_v19 }
  0xae   :  { %v149_v21 = vmax.f32 %v146_v20, 0.0 }
  0xb0   :  { %v150_v22 = vpack.c.bf16 %v149_v21, %v149_v21 }
  0xb2   :  { %227 = vmatmul.bf16.vlgmr.msra.gmra.mxu1 %v150_v22 }
  0xb3   :  { %v147_v23 = vpop.f32.mrf.mxu0 }
 0x12f   :  { %v228_v25 = vpop.f32.mrf.mxu1 }
 0x130   :  { %v229_v26 = vadd.f32 %v353_v24, %v228_v25 }
 0x132   :  { %v232_v27 = vmul.f32 %v229_v26, %v229_v26 }
 0x134   :  { %233 = vadd.xlane.f32.xlu0 %v232_v27 }
 0x137   :  { %v230_v28 = vpop.f32.mrf.mxu1 }
 0x1a7   :  { %v234_v29 = vpop.xlane.xlu0 %233 }
 0x1a8   :  { %v235_v30 = vmax.f32 %v234_v29, 1e-24 }
 0x1aa   :  { %354 = vrsqrt.f32 %v235_v30  ;;  %vm242_vm1 = vweird.f32 %v235_v30 }
 0x1b0   :  { %v355_v31 = vpop.eup %354 }
 0x1b1   :  { %v237_v32 = vmul.f32 %v355_v31, %v235_v30  ;;  %vm243_vm0 = vweird.f32 %v355_v31 }
 0x1b2   :  { %vm244_vm2 = vmor %vm242_vm1, %vm243_vm0 }
 0x1b3   :  { %v238_v33 = vmul.f32 %v355_v31, %v237_v32 }
 0x1b5   :  { %v239_v34 = vmul.f32 0.5, %v238_v33 }
 0x1b7   :  { %v240_v35 = vsub.f32 1.5, %v239_v34 }
 0x1b9   :  { %v241_v36 = vmul.f32 %v355_v31, %v240_v35 }
 0x1bb   :  { %v245_v37 = vsel %vm244_vm2, %v355_v31, %v241_v36 }
 0x1bc   :  { %v246_v38 = vmul.f32 %v245_v37, %v229_v26 }
 0x1be   :  { %247 = vst [vmem:[#allocation8] sm:$0xff] %v246_v38 }
 0x1bf   :  { %258 = dma.vmem_to_hbm [thread:$0]  %s254_s11, 128, %s256_s13, [#allocation4]  }
 0x1c0   :  { %456 = dma.done.wait [#allocation4], 128  }
 0x1c1   :  { %457 = vsyncadd [#allocation4], 4294967168 }
 0x1c2   :  { %263 = vsyncpa [#allocation3], 1 }
 0x1c3   :  { %264 = vsyncpa [#allocation6], 1 }
 0x1c4   :  { %265 = vsyncpa [#allocation4], 1 }

</bundles_post_ra>
